<compile_context>
chip_gen: v7x
topology: tpu7x:2x2x1
jax: 0.10.0
libtpu: 0.0.40
codegen_flags: <defaults>
</compile_context>

<pallas_src>
import functools
import math

import jax
import jax.numpy as jnp
from jax.experimental import pallas as pl
from jax.experimental.pallas import tpu as pltpu

EPS = 1e-6
VMEM_LIMIT = 32 * 1024 * 1024   # explicit scoped-VMEM cap (fits every TPU generation)


# ----------------------------------------------------------------------------
# Kernel 1: pre-RMSNorm + QKV projection (bf16 MXU) + RoPE (packed, all heads at once)
# ----------------------------------------------------------------------------
def _qkv_rope_kernel(x_ref, scale_ref, wq_ref, wk_ref, wv_ref,
                     cos_ref, sina_ref, sinb_ref,
                     q_ref, k_ref, v_ref, *, head_dim, kv_dim, eps):
    x = x_ref[0].astype(jnp.float32)                         # (TS, H)
    var = jnp.mean(x * x, axis=-1, keepdims=True)
    hn = (x * jax.lax.rsqrt(var + eps)) * scale_ref[...]     # RMSNorm in f32
    hn_b = hn.astype(jnp.bfloat16)

    q = jnp.dot(hn_b, wq_ref[...], preferred_element_type=jnp.float32)
    k = jnp.dot(hn_b, wk_ref[...], preferred_element_type=jnp.float32)
    v = jnp.dot(hn_b, wv_ref[...], preferred_element_type=jnp.float32)

    half = head_dim // 2
    cos, sina, sinb = cos_ref[...], sina_ref[...], sinb_ref[...]

    def rope(t, c, a, b):
        # rotate_half for every head in one shot: two lane shifts; signs live in a/b.
        w = t.shape[-1]
        left = jnp.concatenate([t[:, half:], t[:, :half]], axis=-1)            # t[., j+half]
        right = jnp.concatenate([t[:, w - half:], t[:, :w - half]], axis=-1)   # t[., j-half]
        return t * c + left * a + right * b

    q_ref[0] = rope(q, cos, sina, sinb).astype(q_ref.dtype)
    k_ref[0] = rope(k, cos[:, :kv_dim], sina[:, :kv_dim],
                    sinb[:, :kv_dim]).astype(k_ref.dtype)
    v_ref[0] = v.astype(v_ref.dtype)


def qkv_rope(h, p, cfg):
    B, S, H = h.shape
    nh, nkv = cfg["n_head"], cfg["n_kv_head"]
    hd = H // nh
    Hkv = nkv * hd
    TS = min(S, 256)                       # re-derive smaller on v7x (64 MiB VMEM) for huge H
    assert S % TS == 0
    kern = functools.partial(_qkv_rope_kernel, head_dim=hd, kv_dim=Hkv, eps=EPS)
    flops = 2 * B * S * H * (H + 2 * Hkv)
    bytes_acc = 4 * B * S * H + 2 * (H * H + 2 * H * Hkv) + 2 * B * S * (H + 2 * Hkv)
    return pl.pallas_call(
        kern,
        out_shape=(jax.ShapeDtypeStruct((B, S, H), jnp.bfloat16),
                   jax.ShapeDtypeStruct((B, S, Hkv), jnp.bfloat16),
                   jax.ShapeDtypeStruct((B, S, Hkv), jnp.bfloat16)),
        grid=(B, S // TS),
        in_specs=[
            pl.BlockSpec((1, TS, H), lambda b, t: (b, t, 0)),
            pl.BlockSpec((1, H), lambda b, t: (0, 0)),
            pl.BlockSpec((H, H), lambda b, t: (0, 0)),     # grid-invariant -> DMA'd once
            pl.BlockSpec((H, Hkv), lambda b, t: (0, 0)),
            pl.BlockSpec((H, Hkv), lambda b, t: (0, 0)),
            pl.BlockSpec((TS, H), lambda b, t: (t, 0)),
            pl.BlockSpec((TS, H), lambda b, t: (t, 0)),
            pl.BlockSpec((TS, H), lambda b, t: (t, 0)),
        ],
        out_specs=(pl.BlockSpec((1, TS, H), lambda b, t: (b, t, 0)),
                   pl.BlockSpec((1, TS, Hkv), lambda b, t: (b, t, 0)),
                   pl.BlockSpec((1, TS, Hkv), lambda b, t: (b, t, 0))),
        compiler_params=pltpu.CompilerParams(
            dimension_semantics=("parallel", "parallel"),
            vmem_limit_bytes=VMEM_LIMIT),
        cost_estimate=pl.CostEstimate(flops=int(flops), transcendentals=int(B * S),
                                      bytes_accessed=int(bytes_acc)),
    )(h, p["pre_scale"], p["wq"], p["wk"], p["wv"],
      p["cos_p"][:S], p["sin_a_p"][:S], p["sin_b_p"][:S])


# ----------------------------------------------------------------------------
# Kernel 2: flash-style causal GQA attention (online softmax, KV-tile reduction axis)
# ----------------------------------------------------------------------------
def _flash_attn_kernel(q_ref, kt_ref, v_ref, o_ref, m_ref, l_ref, acc_ref,
                       *, n_rep, head_dim, q_tile, kv_tile):
    qi = pl.program_id(2)
    ki = pl.program_id(3)
    rq = q_tile * n_rep
    scale = 1.0 / math.sqrt(head_dim)

    @pl.when(ki == 0)
    def _init():
        m_ref[...] = jnp.full(m_ref.shape, -1e30, jnp.float32)
        l_ref[...] = jnp.zeros(l_ref.shape, jnp.float32)
        acc_ref[...] = jnp.zeros(acc_ref.shape, jnp.float32)

    # Causal: skip KV blocks entirely above the diagonal.
    @pl.when(ki * kv_tile <= qi * q_tile + (q_tile - 1))
    def _update():
        q = q_ref[0, 0]            # (rq, hd)  bf16, all n_rep query heads of this KV group
        kt = kt_ref[0, 0]          # (hd, TK)  bf16 (K pre-transposed on the host)
        v = v_ref[0, 0]            # (TK, hd)  bf16
        s = jnp.dot(q, kt, preferred_element_type=jnp.float32) * scale   # (rq, TK)
        row = jax.lax.broadcasted_iota(jnp.int32, (rq, kv_tile), 0)
        col = jax.lax.broadcasted_iota(jnp.int32, (rq, kv_tile), 1)
        q_pos = qi * q_tile + row // n_rep
        k_pos = ki * kv_tile + col
        s = jnp.where(k_pos <= q_pos, s, -1e30)    # finite mask -> no inf-inf NaN path
        m_prev = m_ref[...]
        m_new = jnp.maximum(m_prev, jnp.max(s, axis=-1, keepdims=True))
        alpha = jnp.exp(m_prev - m_new)
        pexp = jnp.exp(s - m_new)
        l_ref[...] = alpha * l_ref[...] + jnp.sum(pexp, axis=-1, keepdims=True)
        acc_ref[...] = alpha * acc_ref[...] + jnp.dot(
            pexp.astype(v.dtype), v, preferred_element_type=jnp.float32)
        m_ref[...] = m_new

    @pl.when(ki == pl.num_programs(3) - 1)
    def _finalize():
        # pl.reciprocal(approx=True) would move the divide onto the EUP; the exact form is
        # kept so the downstream MoE top-k selection matches the f32 validation reference.
        inv = pl.reciprocal(l_ref[...], approx=False)
        o_ref[0, 0] = (acc_ref[...] * inv).astype(o_ref.dtype)


def flash_attention(q_g, kt_g, v_g, *, n_rep, head_dim):
    B, n_kv, _, hd = q_g.shape
    S = v_g.shape[2]
    nh = n_kv * n_rep
    TQ = min(S, 256)               # size up to ~85% HBM roofline on v5e/v6e; halve on v7x
    TK = min(S, 256)
    assert S % TQ == 0 and S % TK == 0
    RQ = TQ * n_rep
    kern = functools.partial(_flash_attn_kernel, n_rep=n_rep, head_dim=head_dim,
                             q_tile=TQ, kv_tile=TK)
    flops = 4 * B * nh * S * S * hd
    bytes_acc = 2 * (2 * B * S * nh * hd + 2 * B * S * n_kv * hd)
    return pl.pallas_call(
        kern,
        out_shape=jax.ShapeDtypeStruct((B, n_kv, S * n_rep, hd), jnp.bfloat16),
        grid=(B, n_kv, S // TQ, S // TK),
        in_specs=[
            pl.BlockSpec((1, 1, RQ, hd), lambda b, g, qi, ki: (b, g, qi, 0)),
            pl.BlockSpec((1, 1, hd, TK), lambda b, g, qi, ki: (b, g, 0, ki)),
            pl.BlockSpec((1, 1, TK, hd), lambda b, g, qi, ki: (b, g, ki, 0)),
        ],
        out_specs=pl.BlockSpec((1, 1, RQ, hd), lambda b, g, qi, ki: (b, g, qi, 0)),
        scratch_shapes=[
            pltpu.VMEM((RQ, 1), jnp.float32),    # running max
            pltpu.VMEM((RQ, 1), jnp.float32),    # running denom
            pltpu.VMEM((RQ, hd), jnp.float32),   # running numerator
        ],
        compiler_params=pltpu.CompilerParams(
            dimension_semantics=("parallel", "parallel", "parallel", "arbitrary"),
            vmem_limit_bytes=VMEM_LIMIT),
        cost_estimate=pl.CostEstimate(flops=int(flops),
                                      transcendentals=int(B * nh * S * S),
                                      bytes_accessed=int(bytes_acc)),
    )(q_g, kt_g, v_g)


def attention(h, p, cfg):
    B, S, H = h.shape
    nh, nkv = cfg["n_head"], cfg["n_kv_head"]
    hd = H // nh
    n_rep = nh // nkv
    q, k, v = qkv_rope(h, p, cfg)
    # Head-group-major regrouping is wrapper-side layout plumbing (plain XLA, not in-kernel).
    q_g = q.reshape(B, S, nkv, n_rep, hd).transpose(0, 2, 1, 3, 4).reshape(B, nkv, S * n_rep, hd)
    kt_g = k.reshape(B, S, nkv, hd).transpose(0, 2, 3, 1)            # (B, nkv, hd, S)
    v_g = v.reshape(B, S, nkv, hd).transpose(0, 2, 1, 3)             # (B, nkv, S, hd)
    o_g = flash_attention(q_g, kt_g, v_g, n_rep=n_rep, head_dim=hd)
    return o_g.reshape(B, nkv, S, n_rep, hd).transpose(0, 2, 1, 3, 4).reshape(B, S, H)


# ----------------------------------------------------------------------------
# Kernel 3 (even layers): o_proj + residual + post-RMSNorm + SwiGLU MLP + residual.
# Intermediate dim tiled as a reduction ("arbitrary") grid axis with a VMEM accumulator.
# ----------------------------------------------------------------------------
def _mlp_kernel(x_ref, attn_ref, wo_ref, ps_ref, wg_ref, wu_ref, wd_ref, o_ref,
                h1_ref, hn_ref, acc_ref, *, eps):
    it = pl.program_id(1)

    @pl.when(it == 0)
    def _init():
        h1 = x_ref[...] + jnp.dot(attn_ref[...], wo_ref[...],
                                  preferred_element_type=jnp.float32)
        h1_ref[...] = h1
        var = jnp.mean(h1 * h1, axis=-1, keepdims=True)
        hn = (h1 * jax.lax.rsqrt(var + eps)) * ps_ref[...]
        hn_ref[...] = hn.astype(jnp.bfloat16)
        acc_ref[...] = jnp.zeros(acc_ref.shape, jnp.float32)

    hn = hn_ref[...]
    g = jnp.dot(hn, wg_ref[...], preferred_element_type=jnp.float32)
    u = jnp.dot(hn, wu_ref[...], preferred_element_type=jnp.float32)
    a = jax.nn.silu(g) * u
    acc_ref[...] += jnp.dot(a.astype(jnp.bfloat16), wd_ref[...],
                            preferred_element_type=jnp.float32)

    @pl.when(it == pl.num_programs(1) - 1)
    def _fin():
        o_ref[...] = (h1_ref[...] + acc_ref[...]).astype(o_ref.dtype)


def mlp_block(x2d, attn2d, p, cfg):
    T, H = x2d.shape
    I = cfg["intermediate_size"]
    TT = min(T, 256)
    TI = min(I, 1024)
    assert T % TT == 0 and I % TI == 0
    flops = 2 * T * H * H + 6 * T * H * I
    bytes_acc = 8 * T * H + 2 * T * H + 2 * (H * H + 3 * H * I)
    return pl.pallas_call(
        functools.partial(_mlp_kernel, eps=EPS),
        out_shape=jax.ShapeDtypeStruct((T, H), jnp.float32),
        grid=(T // TT, I // TI),
        in_specs=[
            pl.BlockSpec((TT, H), lambda t, i: (t, 0)),     # residual (f32)
            pl.BlockSpec((TT, H), lambda t, i: (t, 0)),     # attention heads out (bf16)
            pl.BlockSpec((H, H), lambda t, i: (0, 0)),      # o_proj weight
            pl.BlockSpec((1, H), lambda t, i: (0, 0)),      # post_norm scale
            pl.BlockSpec((H, TI), lambda t, i: (0, i)),     # gate weight tile
            pl.BlockSpec((H, TI), lambda t, i: (0, i)),     # up weight tile
            pl.BlockSpec((TI, H), lambda t, i: (i, 0)),     # down weight tile
        ],
        out_specs=pl.BlockSpec((TT, H), lambda t, i: (t, 0)),
        scratch_shapes=[
            pltpu.VMEM((TT, H), jnp.float32),    # h1 (residual after o_proj)
            pltpu.VMEM((TT, H), jnp.bfloat16),   # post-norm activations
            pltpu.VMEM((TT, H), jnp.float32),    # down-proj accumulator
        ],
        compiler_params=pltpu.CompilerParams(
            dimension_semantics=("parallel", "arbitrary"),
            vmem_limit_bytes=VMEM_LIMIT),
        cost_estimate=pl.CostEstimate(flops=int(flops), transcendentals=int(T * I + T),
                                      bytes_accessed=int(bytes_acc)),
    )(x2d, attn2d, p["wo"], p["post_scale"], p["wg"], p["wu"], p["wd"])


# ----------------------------------------------------------------------------
# Kernel 4 (odd layers): o_proj + residual + post-RMSNorm + top-k gating + MoE + residual.
# Expert index is an "arbitrary" grid axis -> expert weights stream with double buffering.
# ----------------------------------------------------------------------------
def _moe_kernel(x_ref, attn_ref, wo_ref, ps_ref, wgate_ref, bgate_ref,
                weg_ref, weu_ref, wed_ref, o_ref, logit_ref,
                h1_ref, hn_ref, wsel_ref, acc_ref, *, eps, expert_num, topk):
    e = pl.program_id(1)

    @pl.when(e == 0)
    def _init():
        h1 = x_ref[...] + jnp.dot(attn_ref[...], wo_ref[...],
                                  preferred_element_type=jnp.float32)
        h1_ref[...] = h1
        var = jnp.mean(h1 * h1, axis=-1, keepdims=True)
        hn = (h1 * jax.lax.rsqrt(var + eps)) * ps_ref[...]
        hn_ref[...] = hn
        # Gate logits stay f32 (tiny matmul) so the top-k selection is numerically robust.
        logits = jnp.dot(hn, wgate_ref[...], preferred_element_type=jnp.float32,
                         precision=jax.lax.Precision.HIGHEST) + bgate_ref[...]
        logit_ref[...] = logits
        # Iterative top-k -> sparse combine weights (raw logit for selected, 0 otherwise),
        # matching the PyTorch masked-scatter gating semantics.
        eidx = jax.lax.broadcasted_iota(jnp.int32, logits.shape, 1)
        work = logits
        sel = jnp.zeros(logits.shape, jnp.bool_)
        for _ in range(topk):
            mx = jnp.max(work, axis=-1, keepdims=True)
            cand = jnp.where(work == mx, eidx, expert_num)
            first = jnp.min(cand, axis=-1, keepdims=True)
            onehot = eidx == first
            sel = jnp.logical_or(sel, onehot)
            work = jnp.where(onehot, jnp.float32(-1e30), work)
        wsel_ref[...] = jnp.where(sel, logits, 0.0)
        acc_ref[...] = jnp.zeros(acc_ref.shape, jnp.float32)

    hn_b = hn_ref[...].astype(jnp.bfloat16)
    g = jnp.dot(hn_b, weg_ref[0], preferred_element_type=jnp.float32)
    u = jnp.dot(hn_b, weu_ref[0], preferred_element_type=jnp.float32)
    a = jax.nn.silu(g) * u
    d = jnp.dot(a.astype(jnp.bfloat16), wed_ref[0], preferred_element_type=jnp.float32)
    col = jax.lax.broadcasted_iota(jnp.int32, wsel_ref.shape, 1)
    w_e = jnp.sum(jnp.where(col == e, wsel_ref[...], 0.0), axis=-1, keepdims=True)
    # TODO(synk): for large E, switch to a scalar-prefetch grouped matmul over only the
    #             selected (token, expert) tiles (E/topk FLOP cut); the dense masked form
    #             preserves semantics exactly.
    acc_ref[...] += d * w_e

    @pl.when(e == expert_num - 1)
    def _fin():
        o_ref[...] = (h1_ref[...] + acc_ref[...]).astype(o_ref.dtype)


def moe_block(x2d, attn2d, p, cfg):
    T, H = x2d.shape
    I = cfg["intermediate_size"]
    E = cfg["expert_num"]
    TT = min(T, 256)
    assert T % TT == 0
    flops = 2 * T * H * H + 2 * T * H * E + 6 * E * T * H * I
    bytes_acc = 8 * T * H + 2 * T * H + 2 * (H * H + 3 * E * H * I) + 4 * (H * E + T * E)
    return pl.pallas_call(
        functools.partial(_moe_kernel, eps=EPS, expert_num=E, topk=cfg["topk"]),
        out_shape=(jax.ShapeDtypeStruct((T, H), jnp.float32),
                   jax.ShapeDtypeStruct((T, E), jnp.float32)),
        grid=(T // TT, E),
        in_specs=[
            pl.BlockSpec((TT, H), lambda t, e: (t, 0)),     # residual (f32)
            pl.BlockSpec((TT, H), lambda t, e: (t, 0)),     # attention heads out (bf16)
            pl.BlockSpec((H, H), lambda t, e: (0, 0)),      # o_proj weight
            pl.BlockSpec((1, H), lambda t, e: (0, 0)),      # post_norm scale
            pl.BlockSpec((H, E), lambda t, e: (0, 0)),      # gate weight
            pl.BlockSpec((1, E), lambda t, e: (0, 0)),      # gate bias
            pl.BlockSpec((1, H, I), lambda t, e: (e, 0, 0)),  # expert gate_proj (streamed)
            pl.BlockSpec((1, H, I), lambda t, e: (e, 0, 0)),  # expert up_proj
            pl.BlockSpec((1, I, H), lambda t, e: (e, 0, 0)),  # expert down_proj
        ],
        out_specs=(pl.BlockSpec((TT, H), lambda t, e: (t, 0)),
                   pl.BlockSpec((TT, E), lambda t, e: (t, 0))),
        scratch_shapes=[
            pltpu.VMEM((TT, H), jnp.float32),   # h1
            pltpu.VMEM((TT, H), jnp.float32),   # post-norm activations (f32 for gate)
            pltpu.VMEM((TT, E), jnp.float32),   # sparse combine weights
            pltpu.VMEM((TT, H), jnp.float32),   # expert-sum accumulator
        ],
        compiler_params=pltpu.CompilerParams(
            dimension_semantics=("parallel", "arbitrary"),
            vmem_limit_bytes=VMEM_LIMIT),
        cost_estimate=pl.CostEstimate(flops=int(flops), transcendentals=int(E * T * I + T),
                                      bytes_accessed=int(bytes_acc)),
    )(x2d, attn2d, p["wo"], p["post_scale"], p["wgate"], p["bgate"],
      p["weg"], p["weu"], p["wed"])


# ----------------------------------------------------------------------------
# DecoderLayer wrapper
# ----------------------------------------------------------------------------
def decoder_layer(h, p, cfg, layer_idx):
    B, S, H = h.shape
    attn = attention(h, p, cfg)                 # heads output, pre-o_proj (bf16)
    x2d = h.reshape(B * S, H)
    attn2d = attn.reshape(B * S, H)
    if layer_idx % 2 == 0:
        out2d = mlp_block(x2d, attn2d, p, cfg)
        return out2d.reshape(B, S, H), None
    out2d, gate_logit = moe_block(x2d, attn2d, p, cfg)
    return out2d.reshape(B, S, H), gate_logit


# ----------------------------------------------------------------------------
# Deterministic parameter init (shapes per the PyTorch __init__; big weights in bf16)
# ----------------------------------------------------------------------------
def init_params(key, cfg):
    H = cfg["hidden_size"]
    I = cfg["intermediate_size"]
    nh, nkv = cfg["n_head"], cfg["n_kv_head"]
    hd = H // nh
    E = cfg["expert_num"]
    ks = jax.random.split(key, 16)

    def w(k, shape, s=0.05):
        return jax.random.normal(k, shape, jnp.float32) * s

    bf = lambda a: a.astype(jnp.bfloat16)
    params = dict(
        pre_scale=1.0 + 0.1 * jax.random.normal(ks[12], (1, H), jnp.float32),
        post_scale=1.0 + 0.1 * jax.random.normal(ks[13], (1, H), jnp.float32),
        wq=bf(w(ks[0], (H, H))), wk=bf(w(ks[1], (H, nkv * hd))), wv=bf(w(ks[2], (H, nkv * hd))),
        wo=bf(w(ks[3], (H, H))),
        wg=bf(w(ks[4], (H, I))), wu=bf(w(ks[5], (H, I))), wd=bf(w(ks[6], (I, H))),
        wgate=w(ks[7], (H, E), 0.5), bgate=w(ks[8], (1, E), 0.1),
        weg=bf(w(ks[9], (E, H, I))), weu=bf(w(ks[10], (E, H, I))), wed=bf(w(ks[11], (E, I, H))),
    )
    # rotary tables (same as RotaryEmbedding buffers) + head-packed / sign-folded variants
    inv_freq = 1.0 / (10000.0 ** (jnp.arange(0, hd, 2, dtype=jnp.float32) / hd))
    pos = jnp.arange(cfg["max_seq_len"], dtype=jnp.float32)
    freqs = pos[:, None] * inv_freq[None, :]
    freqs = jnp.concatenate([freqs, freqs], axis=-1)          # [L, hd]
    cos, sin = jnp.cos(freqs), jnp.sin(freqs)
    half = hd // 2
    first = (jnp.arange(hd) < half).astype(jnp.float32)[None, :]
    params.update(
        cos=cos, sin=sin,
        cos_p=jnp.tile(cos, (1, nh)),                  # [L, H]
        sin_a_p=jnp.tile(-sin * first, (1, nh)),       # coeff for t[., j+half]  (j <  half)
        sin_b_p=jnp.tile(sin * (1.0 - first), (1, nh)),  # coeff for t[., j-half] (j >= half)
    )
    return params


# ----------------------------------------------------------------------------
# Pure-JAX reference (direct port of the PyTorch forward). It mirrors the kernels'
# bf16 MXU inputs (f32 accumulation) so the comparison is apples-to-apples.
# ----------------------------------------------------------------------------
def _bdot(a, b):
    return jnp.dot(a.astype(jnp.bfloat16), b.astype(jnp.bfloat16),
                   preferred_element_type=jnp.float32)


def _rms_ref(x, scale):
    xf = x.astype(jnp.float32)
    var = jnp.mean(xf * xf, axis=-1, keepdims=True)
    return (xf * jax.lax.rsqrt(var + EPS)) * scale


def decoder_layer_ref(h, p, cfg, layer_idx):
    B, S, H = h.shape
    nh, nkv = cfg["n_head"], cfg["n_kv_head"]
    hd = H // nh
    n_rep = nh // nkv
    hf = h.astype(jnp.float32)

    hn = _rms_ref(hf, p["pre_scale"][0])
    q = _bdot(hn.reshape(-1, H), p["wq"]).reshape(B, S, nh, hd)
    k = _bdot(hn.reshape(-1, H), p["wk"]).reshape(B, S, nkv, hd)
    v = _bdot(hn.reshape(-1, H), p["wv"]).reshape(B, S, nkv, hd)
    cos = p["cos"][:S][None, :, None, :]
    sin = p["sin"][:S][None, :, None, :]
    rot = lambda t: jnp.concatenate([-t[..., hd // 2:], t[..., :hd // 2]], axis=-1)
    q = q * cos + rot(q) * sin
    k = k * cos + rot(k) * sin
    k = jnp.repeat(k, n_rep, axis=2)
    v = jnp.repeat(v, n_rep, axis=2)
    qb, kb, vb = (t.astype(jnp.bfloat16) for t in (q, k, v))
    scores = jnp.einsum("bqhd,bkhd->bhqk", qb, kb,
                        preferred_element_type=jnp.float32) / math.sqrt(hd)
    causal = jnp.where(jnp.arange(S)[None, :] > jnp.arange(S)[:, None], -jnp.inf, 0.0)
    scores = scores + causal
    m = jnp.max(scores, axis=-1, keepdims=True)
    e = jnp.exp(scores - m)
    pv = jnp.einsum("bhqk,bkhd->bqhd", e.astype(jnp.bfloat16), vb,
                    preferred_element_type=jnp.float32)
    denom = jnp.sum(e, axis=-1).transpose(0, 2, 1)[..., None]
    attn = (pv / denom).reshape(B, S, H)
    h1 = hf + _bdot(attn.reshape(-1, H), p["wo"]).reshape(B, S, H)

    hn2 = _rms_ref(h1, p["post_scale"][0])
    x2d = hn2.reshape(-1, H)
    if layer_idx % 2 == 0:
        g = _bdot(x2d, p["wg"])
        u = _bdot(x2d, p["wu"])
        d = _bdot(jax.nn.silu(g) * u, p["wd"])
        return h1 + d.reshape(B, S, H), None

    E = cfg["expert_num"]
    logits = jnp.dot(x2d, p["wgate"], preferred_element_type=jnp.float32,
                     precision=jax.lax.Precision.HIGHEST) + p["bgate"][0]
    _, topi = jax.lax.top_k(logits, cfg["topk"])
    sel = jnp.any(topi[:, :, None] == jnp.arange(E)[None, None, :], axis=1)
    weights = jnp.where(sel, logits, 0.0)
    acc = jnp.zeros_like(x2d)
    for ei in range(E):
        ge = _bdot(x2d, p["weg"][ei])
        ue = _bdot(x2d, p["weu"][ei])
        acc = acc + _bdot(jax.nn.silu(ge) * ue, p["wed"][ei]) * weights[:, ei:ei + 1]
    return h1 + acc.reshape(B, S, H), logits


# ----------------------------------------------------------------------------
if __name__ == "__main__":
    cfg = dict(hidden_size=32, n_head=4, n_kv_head=2, intermediate_size=64,
               max_seq_len=16, expert_num=4, topk=2)

    key = jax.random.PRNGKey(0)
    kp, kx = jax.random.split(key)
    params = init_params(kp, cfg)

    B, S, H = 2, 8, cfg["hidden_size"]
    h = jax.random.normal(kx, (B, S, H), jnp.float32)

    # layer_idx = 0 -> MLP branch ; layer_idx = 1 -> MoE branch
    out0, gl0 = decoder_layer(h, params, cfg, layer_idx=0)
    out1, gl1 = decoder_layer(h, params, cfg, layer_idx=1)
    jax.block_until_ready((out0, out1, gl1))

    # reference check
    r0, _ = decoder_layer_ref(h, params, cfg, 0)
    r1, rgl = decoder_layer_ref(h, params, cfg, 1)
    assert gl0 is None
    assert bool(jnp.allclose(out0, r0, atol=2e-2, rtol=2e-2)), "MLP-layer mismatch"
    assert bool(jnp.allclose(out1, r1, atol=2e-2, rtol=2e-2)), "MoE-layer mismatch"
    assert bool(jnp.allclose(gl1, rgl, atol=2e-2, rtol=2e-2)), "gate_logit mismatch"

    print("KERNEL_OK")
</pallas_src>

<mosaic_0001>
module attributes {stable_mosaic.version = 11 : i64} {
  func.func @_qkv_rope_kernel(%arg0: i32, %arg1: i32, %arg2: memref<1x8x32xf32, #tpu.memory_space<vmem>>, %arg3: memref<1x32xf32, #tpu.memory_space<vmem>>, %arg4: memref<32x32xbf16, #tpu.memory_space<vmem>>, %arg5: memref<32x16xbf16, #tpu.memory_space<vmem>>, %arg6: memref<32x16xbf16, #tpu.memory_space<vmem>>, %arg7: memref<8x32xf32, #tpu.memory_space<vmem>>, %arg8: memref<8x32xf32, #tpu.memory_space<vmem>>, %arg9: memref<8x32xf32, #tpu.memory_space<vmem>>, %arg10: memref<1x8x32xbf16, #tpu.memory_space<vmem>>, %arg11: memref<1x8x16xbf16, #tpu.memory_space<vmem>>, %arg12: memref<1x8x16xbf16, #tpu.memory_space<vmem>>) attributes {dimension_semantics = [#tpu.dimension_semantics<parallel>, #tpu.dimension_semantics<parallel>], iteration_bounds = array<i64: 2, 1>, scalar_prefetch = 0 : i64, scratch_operands = 0 : i64, tpu.core_type = #tpu.core_type<tc>, window_params = [{transform_indices = @transform_0, window_bounds = array<i64: 1, 8, 32>}, {pipeline_mode = #tpu.pipeline_mode<synchronous>, transform_indices = @transform_1, window_bounds = array<i64: 1, 32>}, {pipeline_mode = #tpu.pipeline_mode<synchronous>, transform_indices = @transform_2, window_bounds = array<i64: 32, 32>}, {pipeline_mode = #tpu.pipeline_mode<synchronous>, transform_indices = @transform_3, window_bounds = array<i64: 32, 16>}, {pipeline_mode = #tpu.pipeline_mode<synchronous>, transform_indices = @transform_4, window_bounds = array<i64: 32, 16>}, {transform_indices = @transform_5, window_bounds = array<i64: 8, 32>}, {transform_indices = @transform_6, window_bounds = array<i64: 8, 32>}, {transform_indices = @transform_7, window_bounds = array<i64: 8, 32>}, {transform_indices = @transform_8, window_bounds = array<i64: 1, 8, 32>}, {transform_indices = @transform_9, window_bounds = array<i64: 1, 8, 16>}, {transform_indices = @transform_10, window_bounds = array<i64: 1, 8, 16>}]} {
    %c0 = arith.constant 0 : index
    %c0_0 = arith.constant 0 : index
    %c0_1 = arith.constant 0 : index
    %0 = vector.load %arg2[%c0, %c0_0, %c0_1] : memref<1x8x32xf32, #tpu.memory_space<vmem>>, vector<1x8x32xf32>
    %1 = vector.shape_cast %0 : vector<1x8x32xf32> to vector<8x32xf32>
    %2 = arith.mulf %1, %1 : vector<8x32xf32>
    %cst = arith.constant dense<0.000000e+00> : vector<8xf32>
    %3 = vector.multi_reduction <add>, %2, %cst [1] : vector<8x32xf32> to vector<8xf32>
    %4 = vector.shape_cast %3 : vector<8xf32> to vector<8x1xf32>
    %cst_2 = arith.constant 3.200000e+01 : f32
    %5 = vector.broadcast %cst_2 : f32 to vector<8x1xf32>
    %6 = arith.divf %4, %5 : vector<8x1xf32>
    %cst_3 = arith.constant 9.99999997E-7 : f32
    %7 = vector.broadcast %cst_3 : f32 to vector<8x1xf32>
    %8 = arith.addf %6, %7 : vector<8x1xf32>
    %9 = math.rsqrt %8 : vector<8x1xf32>
    %10 = vector.broadcast %9 : vector<8x1xf32> to vector<8x32xf32>
    %11 = arith.mulf %1, %10 : vector<8x32xf32>
    %c0_4 = arith.constant 0 : index
    %c0_5 = arith.constant 0 : index
    %12 = vector.load %arg3[%c0_4, %c0_5] : memref<1x32xf32, #tpu.memory_space<vmem>>, vector<1x32xf32>
    %13 = vector.broadcast %12 : vector<1x32xf32> to vector<8x32xf32>
    %14 = arith.mulf %11, %13 : vector<8x32xf32>
    %15 = arith.truncf %14 : vector<8x32xf32> to vector<8x32xbf16>
    %c0_6 = arith.constant 0 : index
    %c0_7 = arith.constant 0 : index
    %16 = vector.load %arg4[%c0_6, %c0_7] : memref<32x32xbf16, #tpu.memory_space<vmem>>, vector<32x32xbf16>
    %cst_8 = arith.constant dense<0.000000e+00> : vector<8x32xf32>
    %17 = tpu.matmul %15, %16, %cst_8 {dimension_numbers = #tpu.dot_dimension_numbers<[1], [0], [0], [1], [0, 0, 1, 1], [], []>} : vector<8x32xbf16>, vector<32x32xbf16>, vector<8x32xf32> -> vector<8x32xf32>
    %c0_9 = arith.constant 0 : index
    %c0_10 = arith.constant 0 : index
    %18 = vector.load %arg5[%c0_9, %c0_10] : memref<32x16xbf16, #tpu.memory_space<vmem>>, vector<32x16xbf16>
    %cst_11 = arith.constant dense<0.000000e+00> : vector<8x16xf32>
    %19 = tpu.matmul %15, %18, %cst_11 {dimension_numbers = #tpu.dot_dimension_numbers<[1], [0], [0], [1], [0, 0, 1, 1], [], []>} : vector<8x32xbf16>, vector<32x16xbf16>, vector<8x16xf32> -> vector<8x16xf32>
    %c0_12 = arith.constant 0 : index
    %c0_13 = arith.constant 0 : index
    %20 = vector.load %arg6[%c0_12, %c0_13] : memref<32x16xbf16, #tpu.memory_space<vmem>>, vector<32x16xbf16>
    %cst_14 = arith.constant dense<0.000000e+00> : vector<8x16xf32>
    %21 = tpu.matmul %15, %20, %cst_14 {dimension_numbers = #tpu.dot_dimension_numbers<[1], [0], [0], [1], [0, 0, 1, 1], [], []>} : vector<8x32xbf16>, vector<32x16xbf16>, vector<8x16xf32> -> vector<8x16xf32>
    %c0_15 = arith.constant 0 : index
    %c0_16 = arith.constant 0 : index
    %22 = vector.load %arg7[%c0_15, %c0_16] : memref<8x32xf32, #tpu.memory_space<vmem>>, vector<8x32xf32>
    %c0_17 = arith.constant 0 : index
    %c0_18 = arith.constant 0 : index
    %23 = vector.load %arg8[%c0_17, %c0_18] : memref<8x32xf32, #tpu.memory_space<vmem>>, vector<8x32xf32>
    %c0_19 = arith.constant 0 : index
    %c0_20 = arith.constant 0 : index
    %24 = vector.load %arg9[%c0_19, %c0_20] : memref<8x32xf32, #tpu.memory_space<vmem>>, vector<8x32xf32>
    %25 = vector.extract_strided_slice %17 {offsets = [0, 4], sizes = [8, 28], strides = [1, 1]} : vector<8x32xf32> to vector<8x28xf32>
    %26 = vector.extract_strided_slice %17 {offsets = [0, 0], sizes = [8, 4], strides = [1, 1]} : vector<8x32xf32> to vector<8x4xf32>
    %27 = tpu.concatenate %25, %26 in 1 : vector<8x28xf32>, vector<8x4xf32> -> vector<8x32xf32>
    %28 = vector.extract_strided_slice %17 {offsets = [0, 28], sizes = [8, 4], strides = [1, 1]} : vector<8x32xf32> to vector<8x4xf32>
    %29 = vector.extract_strided_slice %17 {offsets = [0, 0], sizes = [8, 28], strides = [1, 1]} : vector<8x32xf32> to vector<8x28xf32>
    %30 = tpu.concatenate %28, %29 in 1 : vector<8x4xf32>, vector<8x28xf32> -> vector<8x32xf32>
    %31 = arith.mulf %17, %22 : vector<8x32xf32>
    %32 = arith.mulf %27, %23 : vector<8x32xf32>
    %33 = arith.addf %31, %32 : vector<8x32xf32>
    %34 = arith.mulf %30, %24 : vector<8x32xf32>
    %35 = arith.addf %33, %34 : vector<8x32xf32>
    %36 = arith.truncf %35 : vector<8x32xf32> to vector<8x32xbf16>
    %c0_21 = arith.constant 0 : index
    %c0_22 = arith.constant 0 : index
    %c0_23 = arith.constant 0 : index
    %37 = vector.load %arg10[%c0_21, %c0_22, %c0_23] : memref<1x8x32xbf16, #tpu.memory_space<vmem>>, vector<1x8x32xbf16>
    %38 = vector.shape_cast %37 : vector<1x8x32xbf16> to vector<8x32xbf16>
    %39 = vector.shape_cast %36 : vector<8x32xbf16> to vector<1x8x32xbf16>
    tpu.vector_store %arg10[%c0_21, %c0_22, %c0_23], %39 {strides = array<i32>} : memref<1x8x32xbf16, #tpu.memory_space<vmem>>, vector<1x8x32xbf16>,
    %40 = vector.extract_strided_slice %22 {offsets = [0, 0], sizes = [8, 16], strides = [1, 1]} : vector<8x32xf32> to vector<8x16xf32>
    %41 = vector.extract_strided_slice %23 {offsets = [0, 0], sizes = [8, 16], strides = [1, 1]} : vector<8x32xf32> to vector<8x16xf32>
    %42 = vector.extract_strided_slice %24 {offsets = [0, 0], sizes = [8, 16], strides = [1, 1]} : vector<8x32xf32> to vector<8x16xf32>
    %43 = vector.extract_strided_slice %19 {offsets = [0, 4], sizes = [8, 12], strides = [1, 1]} : vector<8x16xf32> to vector<8x12xf32>
    %44 = vector.extract_strided_slice %19 {offsets = [0, 0], sizes = [8, 4], strides = [1, 1]} : vector<8x16xf32> to vector<8x4xf32>
    %45 = tpu.concatenate %43, %44 in 1 : vector<8x12xf32>, vector<8x4xf32> -> vector<8x16xf32>
    %46 = vector.extract_strided_slice %19 {offsets = [0, 12], sizes = [8, 4], strides = [1, 1]} : vector<8x16xf32> to vector<8x4xf32>
    %47 = vector.extract_strided_slice %19 {offsets = [0, 0], sizes = [8, 12], strides = [1, 1]} : vector<8x16xf32> to vector<8x12xf32>
    %48 = tpu.concatenate %46, %47 in 1 : vector<8x4xf32>, vector<8x12xf32> -> vector<8x16xf32>
    %49 = arith.mulf %19, %40 : vector<8x16xf32>
    %50 = arith.mulf %45, %41 : vector<8x16xf32>
    %51 = arith.addf %49, %50 : vector<8x16xf32>
    %52 = arith.mulf %48, %42 : vector<8x16xf32>
    %53 = arith.addf %51, %52 : vector<8x16xf32>
    %54 = arith.truncf %53 : vector<8x16xf32> to vector<8x16xbf16>
    %c0_24 = arith.constant 0 : index
    %c0_25 = arith.constant 0 : index
    %c0_26 = arith.constant 0 : index
    %55 = vector.load %arg11[%c0_24, %c0_25, %c0_26] : memref<1x8x16xbf16, #tpu.memory_space<vmem>>, vector<1x8x16xbf16>
    %56 = vector.shape_cast %55 : vector<1x8x16xbf16> to vector<8x16xbf16>
    %57 = vector.shape_cast %54 : vector<8x16xbf16> to vector<1x8x16xbf16>
    tpu.vector_store %arg11[%c0_24, %c0_25, %c0_26], %57 {strides = array<i32>} : memref<1x8x16xbf16, #tpu.memory_space<vmem>>, vector<1x8x16xbf16>,
    %58 = arith.truncf %21 : vector<8x16xf32> to vector<8x16xbf16>
    %c0_27 = arith.constant 0 : index
    %c0_28 = arith.constant 0 : index
    %c0_29 = arith.constant 0 : index
    %59 = vector.load %arg12[%c0_27, %c0_28, %c0_29] : memref<1x8x16xbf16, #tpu.memory_space<vmem>>, vector<1x8x16xbf16>
    %60 = vector.shape_cast %59 : vector<1x8x16xbf16> to vector<8x16xbf16>
    %61 = vector.shape_cast %58 : vector<8x16xbf16> to vector<1x8x16xbf16>
    tpu.vector_store %arg12[%c0_27, %c0_28, %c0_29], %61 {strides = array<i32>} : memref<1x8x16xbf16, #tpu.memory_space<vmem>>, vector<1x8x16xbf16>,
    return
  }
  func.func @transform_0(%arg0: i32, %arg1: i32) -> (i32, i32, i32) {
    %c0_i32 = arith.constant 0 : i32
    %c0_i32_0 = arith.constant 0 : i32
    return %arg0, %arg1, %c0_i32 : i32, i32, i32
  }
  func.func @transform_1(%arg0: i32, %arg1: i32) -> (i32, i32) {
    %c0_i32 = arith.constant 0 : i32
    %c0_i32_0 = arith.constant 0 : i32
    %c0_i32_1 = arith.constant 0 : i32
    return %c0_i32, %c0_i32_0 : i32, i32
  }
  func.func @transform_2(%arg0: i32, %arg1: i32) -> (i32, i32) {
    %c0_i32 = arith.constant 0 : i32
    %c0_i32_0 = arith.constant 0 : i32
    %c0_i32_1 = arith.constant 0 : i32
    return %c0_i32, %c0_i32_0 : i32, i32
  }
  func.func @transform_3(%arg0: i32, %arg1: i32) -> (i32, i32) {
    %c0_i32 = arith.constant 0 : i32
    %c0_i32_0 = arith.constant 0 : i32
    %c0_i32_1 = arith.constant 0 : i32
    return %c0_i32, %c0_i32_0 : i32, i32
  }
  func.func @transform_4(%arg0: i32, %arg1: i32) -> (i32, i32) {
    %c0_i32 = arith.constant 0 : i32
    %c0_i32_0 = arith.constant 0 : i32
    %c0_i32_1 = arith.constant 0 : i32
    return %c0_i32, %c0_i32_0 : i32, i32
  }
  func.func @transform_5(%arg0: i32, %arg1: i32) -> (i32, i32) {
    %c0_i32 = arith.constant 0 : i32
    %c0_i32_0 = arith.constant 0 : i32
    return %arg1, %c0_i32 : i32, i32
  }
  func.func @transform_6(%arg0: i32, %arg1: i32) -> (i32, i32) {
    %c0_i32 = arith.constant 0 : i32
    %c0_i32_0 = arith.constant 0 : i32
    return %arg1, %c0_i32 : i32, i32
  }
  func.func @transform_7(%arg0: i32, %arg1: i32) -> (i32, i32) {
    %c0_i32 = arith.constant 0 : i32
    %c0_i32_0 = arith.constant 0 : i32
    return %arg1, %c0_i32 : i32, i32
  }
  func.func @transform_8(%arg0: i32, %arg1: i32) -> (i32, i32, i32) {
    %c0_i32 = arith.constant 0 : i32
    %c0_i32_0 = arith.constant 0 : i32
    return %arg0, %arg1, %c0_i32 : i32, i32, i32
  }
  func.func @transform_9(%arg0: i32, %arg1: i32) -> (i32, i32, i32) {
    %c0_i32 = arith.constant 0 : i32
    %c0_i32_0 = arith.constant 0 : i32
    return %arg0, %arg1, %c0_i32 : i32, i32, i32
  }
  func.func @transform_10(%arg0: i32, %arg1: i32) -> (i32, i32, i32) {
    %c0_i32 = arith.constant 0 : i32
    %c0_i32_0 = arith.constant 0 : i32
    return %arg0, %arg1, %c0_i32 : i32, i32, i32
  }
}

</mosaic_0001>

<bundles_post_ra>
// kernel: tpu_custom_call.1
= control target key start
LH: loop header
LB: loop body
LE: loop exit
PB: predicated region body
PF: predicated region fallthrough
CT: control target
= control target key end

     0   :  { %s1530_s0 = inlined_call_operand.vmem [shape: f32[2,8,32], index: 0, kind: input, shape index: {}]   ;;  %s1531_s1 = inlined_call_operand.vmem [shape: f32[1,32], index: 1, kind: input, shape index: {}]   ;;  %s1532_s2 = inlined_call_operand.vmem [shape: bf16[32,32], index: 2, kind: input, shape index: {}]   ;;  %s1533_s3 = inlined_call_operand.vmem [shape: bf16[32,16], index: 3, kind: input, shape index: {}]   ;;  %s1534_s4 = inlined_call_operand.vmem [shape: bf16[32,16], index: 4, kind: input, shape index: {}]   ;;  %s1535_s5 = inlined_call_operand.vmem [shape: f32[8,32], index: 5, kind: input, shape index: {}]   ;;  %s1536_s6 = inlined_call_operand.vmem [shape: f32[8,32], index: 6, kind: input, shape index: {}]   ;;  %s1537_s7 = inlined_call_operand.vmem [shape: f32[8,32], index: 7, kind: input, shape index: {}]   ;;  %s1538_s8 = inlined_call_operand.hbm [shape: bf16[2,8,32], index: 8, kind: output, shape index: {0}]   ;;  %s1539_s9 = inlined_call_operand.hbm [shape: bf16[2,8,16], index: 9, kind: output, shape index: {1}]   ;;  %s1540_s10 = inlined_call_operand.hbm [shape: bf16[2,8,16], index: 10, kind: output, shape index: {2}]  }
   0x1   :  { %1543 = sst [smem:[#allocation9_spill]] %s1530_s0 }
   0x2   :  { %1544 = sst [smem:[#allocation10_spill]] %s1531_s1 }
   0x3   :  { %1545 = sst [smem:[#allocation11_spill]] %s1532_s2 }
   0x4   :  { %1546 = sst [smem:[#allocation12_spill]] %s1533_s3 }
   0x5   :  { %16 = vsyncpa [#allocation3], 0 }
   0x6   :  { %18 = vsyncpa [#allocation3 + $0x1], 0 }
   0x7   :  { %19 = vsyncpa [#allocation5], 0 }
   0x8   :  { %21 = vsyncpa [#allocation5 + $0x1], 0  ;;  %s1281_s13 = smov 0   ;;  %s1283_s14 = smov 0  }
   0x9   :  { %s1285_s15 = smov 0   ;;  %s1287_s16 = smov 0  }
   0xa   :  { %s1289_s17 = smov 0   ;;  %s1291_s18 = smov 0  }
   0xb LB: > { %s931_s19 = sadd.s32 4294967295, %s1213_s18   ;;  %s1541_s20 = sadd.s32 4294967294, %s1213_s18   ;;  %s1213_s18 = sphi %s1291_s18, %s27_s18   ;;  %s1209_s17 = sphi %s1289_s17, %s1561_s17   ;;  %s1205_s16 = sphi %s1287_s16, %s1560_s16   ;;  %s1201_s15 = sphi %s1285_s15, %s1559_s15   ;;  %s1197_s14 = sphi %s1283_s14, %s1558_s14   ;;  %s1193_s13 = sphi %s1281_s13, %s1557_s13  }
   0xc   : > { %s39_s21 = sadd.s32 1, %s1209_s17  ;;  %s238_s22 = sadd.s32 1, %s1201_s15 }
   0xd   : > { %p41_p0 = scmp.ge.s32.totalorder %s39_s21, 2  ;;  %p248_p1 = scmp.ne.s32.totalorder %s1201_s15, %s1197_s14 }
   0xe   : > { %p249_p2 = scmp.eq.s32.totalorder %s931_s19, 1  ;;  %p254_p3 = scmp.ne.s32.totalorder %s1197_s14, %s1193_s13 }
   0xf   : > { %s1563_s21 = smov (%p41_p0, %s39_s21), 0  ;;  %p255_p5 = scmp.eq.s32.totalorder %s1541_s20, 1 }
  0x10   : > { %p1323_p4 = por %p249_p2, %p248_p1  ;;  %s233_s24 = ssub.s32 %s1209_s17, %s1563_s21 }
  0x11   : > { %p938_p6 = scmp.ge.s32.totalorder %s1213_s18, 1  ;;  %p236_p7 = scmp.eq.s32.totalorder %s233_s24, 0 }
  0x12   : > { %p1332_p8 = por %p255_p5, %p254_p3  ;;  %p372_p9 = scmp.lt.s32.totalorder %s1213_s18, 3 }
  0x13   : > { %s1338_s26 = scalar_select %p236_p7, %s1201_s15, %s238_s22  }
  0x14   : > { %p373_p10 = pnand %p938_p6, %p372_p9 }
  0x15   : > { %p434_p11 = scmp.lt.s32.totalorder (!%p373_p10), %s1205_s16, 1  ;;  %s1549_s0 = sld [smem:[#allocation9_spill]] (!%p373_p10)  ;;  %vm456_vm0 = vcmask (!%p373_p10), 261120   ;;  %v1215_v5 = vmov (!%p373_p10), 0.0   ;;  %vm1216_vm1 = vmmov (!%p373_p10), 0   ;;  %v1071_v15 = vld [vmem:[%s1534_s4] sm:$0xff] (!%p373_p10)  }
  0x16   : > { %376 = sbr.rel (%p373_p10) target bundleno = 614 (0x266), region = 52  ;;  %s1550_s2 = sld [smem:[#allocation11_spill]] (!%p373_p10)  ;;  %970 = vmatprep.subr.bf16.mxu0 (!%p373_p10), %v1215_v5  ;;  %978 = vmatprep.subr.bf16.mxu1 (!%p373_p10), %v1215_v5  ;;  %v1072_v17 = vld [vmem:[%s1534_s4 + $0x8] sm:$0xff] (!%p373_p10)   ;;  %vm695_vm2 = vcmask (!%p373_p10), 125952   ;;  %vm680_vm3 = vcmask (!%p373_p10), 97280   ;;  %v646_v35 = vld [vmem:[%s1536_s6] sm:$0xff] (!%p373_p10) }
  0x17   : > { %s1551_s3 = sld [smem:[#allocation12_spill]] (!%p373_p10)  ;;  %974 = vmatprep.mubr.msk.bf16.mxu0 (!%p373_p10), %vm1216_vm1, %v1215_v5  ;;  %982 = vmatprep.mubr.msk.bf16.mxu1 (!%p373_p10), %vm1216_vm1, %v1215_v5  ;;  %s1552_s1 = sld [smem:[#allocation10_spill]] (!%p373_p10)  ;;  %v645_v38 = vld [vmem:[%s1535_s5] sm:$0xff] (!%p373_p10)  ;;  %vm663_vm4 = vcmask (!%p373_p10), 31744   ;;  %vm655_vm5 = vcmask (!%p373_p10), 228352  }
  0x18   : > { %s1218_s29 = smov (!%p373_p10), 124   ;;  %s1542_s30 = sand.u32 (!%p373_p10), 1, %s1197_s14   ;;  %v647_v40 = vld [vmem:[%s1537_s7] sm:$0xff] (!%p373_p10) }
  0x19   : > { %s1379_s20 = sshll.u32 (!%p373_p10), %s1542_s30, 2  ;;  %s1220_s22 = smov (!%p373_p10), 116  }
  0x1a   : > { %s433_s12 = scalar_lea.vmem (!%p373_p10), [#allocation6], %s1379_s20  ;;  %s1221_s24 = smov (!%p373_p10), 4  }
  0x1c   : > { %v1067_v3 = vld [vmem:[%s1550_s2] sm:$0xff] (!%p373_p10)   ;;  %v1069_v6 = vld [vmem:[%s1550_s2 + $0x8] sm:$0xff] (!%p373_p10)  }
  0x1d   : > { %s435_s27 = scalar_select %p434_p11, %s1205_s16, 1  ;;  %v1068_v4 = vld [vmem:[%s1551_s3] sm:$0xff]   ;;  %971 = vmatpush3.bf16.msra.mxu0 %v1067_v3  ;;  %v1070_v7 = vld [vmem:[%s1551_s3 + $0x8] sm:$0xff]  }
  0x1e   : > { %979 = vmatpush3.bf16.msra.mxu1 %v1068_v4  ;;  %972 = vmatprep.subr.bf16.mxu0 %v1215_v5  ;;  %v943_v12 = vld [vmem:[%s1552_s1] ss:$0 sm:$0xff] }
  0x1f   : > { %s942_s28 = sshll.u32 %s435_s27, 3  ;;  %980 = vmatprep.subr.bf16.mxu1 %v1215_v5  ;;  %s1222_s27 = smov 100  }
  0x20   : > { %s440_s11 = scalar_lea.vmem %s1549_s0, %s942_s28  ;;  %s1217_s28 = smov 12  }
  0x21   : > { %v454_v0 = vld [vmem:[%s440_s11] sm:$0xff]  ;;  %973 = vmatpush3.bf16.msra.mxu0 %v1069_v6  ;;  %s1219_s11 = smov 28   ;;  %s1223_s0 = smov [#allocation4]  }
  0x22   : > { %v455_v1 = vmul.f32 %v454_v0, %v454_v0  ;;  %981 = vmatpush3.bf16.msra.mxu1 %v1070_v7  ;;  %986 = vmatprep.subr.bf16.mxu0 %v1215_v5 }
  0x24   : > { %v457_v2 = vsel %vm456_vm0, %v455_v1, 0.0 }
  0x25   : > { %458 = vadd.xlane.f32.xlu0 %v457_v2 }
  0xb2   : > { %v459_v8 = vpop.xlane.xlu0 %458 }
  0xb3   : > { %v461_v9 = vmul.f32 0.03125, %v459_v8 }
  0xb5   : > { %v462_v10 = vadd.f32 1e-06, %v461_v9 }
  0xb7   : > { %1073 = vrsqrt.f32 %v462_v10 }
  0xc1   : > { %v1074_v11 = vpop.eup %1073 }
  0xc2   : > { %v464_v13 = vmul.f32 %v1074_v11, %v454_v0 }
  0xc4   : > { %v472_v14 = vmul.f32 %v943_v12, %v464_v13 }
  0xc6   : > { %v473_v16 = vpack.c.bf16 %v472_v14, %v472_v14 }
  0xc8   : > { %975 = vmatmul.mubr.msk.bf16.vlgmr.msra.gmra.mrb[0].mxu0 %vm456_vm0, %v473_v16  ;;  %983 = vmatmul.mubr.msk.bf16.vlgmr.msra.gmra.mrb[0].mxu1 %vm456_vm0, %v473_v16 }
  0xc9   : > { %987 = vmatpush3.bf16.msra.mxu0 %v1071_v15  ;;  %990 = vmatprep.mubr.msk.bf16.mxu0 %vm1216_vm1, %v1215_v5 }
  0xca   : > { %988 = vmatprep.subr.bf16.mxu0 %v1215_v5 }
  0xcd   : > { %989 = vmatpush3.bf16.msra.mxu0 %v1072_v17 }
  0xd0   : > { %991 = vmatmul.mubr.msk.bf16.vlgmr.msra.gmra.mrb[4].mxu0 %vm456_vm0, %v473_v16 }
 0x19b   : > { %v1373_v18 = vpop.f32.mrb[0].mxu0  ;;  %v583_v19 = vpop.f32.mrb[0].mxu1 }
 0x19c   : > { %677 = vrot.lane.b32.xlu1 %v583_v19, %s1217_s28  ;;  %674 = vrot.lane.b32.xlu0 %v583_v19, %s1218_s29  ;;  %v976_v20 = vpop.f32.mrb[1].mxu0  ;;  %v984_v21 = vpop.f32.mrb[1].mxu1  ;;  %v689_v41 = vmul.f32 %v645_v38, %v583_v19  ;;  %s1400_s28 = sand.u32 1, %s931_s19   ;;  %v665_v51 = vmul.f32 %v645_v38, %v1373_v18 }
 0x19d   : > { %v530_v22 = vpop.f32.mrb[2].mxu0  ;;  %v586_v23 = vpop.f32.mrb[2].mxu1 }
 0x19e   : > { %v977_v24 = vpop.f32.mrb[3].mxu0  ;;  %v985_v25 = vpop.f32.mrb[3].mxu1 }
 0x1a0   : > { %649 = vrot.lane.b32.xlu1 %v1373_v18, %s1218_s29  ;;  %s1403_s29 = sshll.u32 %s1205_s16, 6 }
 0x1a1   : > { %s1412_s19 = scalar_lea.hbm %s1539_s9, %s1403_s29  ;;  %s1420_s1 = scalar_lea.hbm %s1540_s10, %s1403_s29 }
 0x1a3   : > { %v639_v26 = vpop.f32.mrb[4].mxu0 }
 0x1a4   : > { %v697_v27 = vpack.c.bf16 %v639_v26, %v639_v26  ;;  %652 = vrot.lane.b32.xlu1 %v1373_v18, %s1219_s11  ;;  %v992_v28 = vpop.f32.mrb[5].mxu0  ;;  %s426_s11 = scalar_lea.vmem [#allocation4], %s1379_s20 }
 0x1a5   : > { %v642_v29 = vpop.f32.mrb[6].mxu0 }
 0x1a6   : > { %698 = vst.msk [vmem:[%s433_s12] sm:$0xf] %vm695_vm2, %v697_v27  ;;  %v993_v30 = vpop.f32.mrb[7].mxu0 }
 0x1a8   : > { %682 = vrot.lane.b32.xlu1 %v583_v19, %s1220_s22  ;;  %s738_s22 = sshll.u32 %s426_s11, 4  ;;  %s1414_s22 = int_to_ptr.vmem [resolvable:$true] %s738_s22 }
 0x1ac   : > { %685 = vrot.lane.b32.xlu1 %v583_v19, %s1221_s24 }
 0x1b0   : > { %657 = vrot.lane.b32.xlu1 %v1373_v18, %s1222_s27  ;;  %s1079_s27 = sshll.u32 %s1223_s0, 4  ;;  %s1080_s27 = int_to_ptr.vmem [resolvable:$false] %s1079_s27 }
 0x1b1   : > { %s1081_s16 = scalar_lea.vmem %s1080_s27, 128  ;;  %p1082_p1 = scmp.lt.s32.totalorder %s1414_s22, %s1080_s27 }
 0x1b4   : > { %660 = vrot.lane.b32.xlu1 %v1373_v18, %s1221_s24  ;;  %s752_s24 = sshll.u32 %s433_s12, 4  ;;  %s1075_s12 = scalar_lea.vmem %s1414_s22, 64  ;;  %s1422_s24 = int_to_ptr.vmem [resolvable:$true] %s752_s24 }
 0x1b5   : > { %p1076_p12 = scmp.ne.s32.totalorder %s1414_s22, %s1075_s12  ;;  %p1083_p2 = scmp.lt.s32.totalorder %s1081_s16, %s1075_s12 }
 0x1b7   : > { %p1077_p13 = pnand %p1076_p12, %p1323_p4  ;;  %p1084_p3 = por %p1083_p2, %p1082_p1 }
 0x1b9   : > { %p1078_p0 = pneg %p1077_p13 }
 0x1bb   : > { %p1085_p5 = pnand %p1084_p3, %p1078_p0 }
 0x20e   : > { %v678_v31 = vpop.permute.xlu1 %677  ;;  %v675_v33 = vpop.permute.xlu0 %674 }
 0x20f   : > { %v681_v36 = vsel %vm680_vm3, %v675_v33, %v678_v31 }
 0x210   : > { %v690_v39 = vmul.f32 %v681_v36, %v646_v35 }
 0x212   : > { %v650_v32 = vpop.permute.xlu1 %649  ;;  %v691_v44 = vadd.f32 %v690_v39, %v689_v41 }
 0x216   : > { %v653_v34 = vpop.permute.xlu1 %652 }
 0x217   : > { %v656_v46 = vsel %vm655_vm5, %v650_v32, %v653_v34 }
 0x218   : > { %v666_v49 = vmul.f32 %v656_v46, %v646_v35 }
 0x21a   : > { %v683_v37 = vpop.permute.xlu1 %682 }
 0x21e   : > { %v686_v42 = vpop.permute.xlu1 %685 }
 0x21f   : > { %v688_v43 = vsel %vm663_vm4, %v683_v37, %v686_v42 }
 0x220   : > { %v692_v45 = vmul.f32 %v688_v43, %v647_v40 }
 0x222   : > { %v693_v47 = vadd.f32 %v692_v45, %v691_v44  ;;  %v658_v48 = vpop.permute.xlu1 %657 }
 0x224   : > { %v694_v50 = vpack.c.bf16 %v693_v47, %v693_v47 }
 0x226   : > { %v661_v52 = vpop.permute.xlu1 %660  ;;  %696 = vst.msk [vmem:[%s426_s11] sm:$0xf] %vm695_vm2, %v694_v50 }
 0x227   : > { %v664_v53 = vsel %vm663_vm4, %v658_v48, %v661_v52 }
 0x228   : > { %1088 = shalt.err (!%p1085_p5)
}
 0x229   : > { %s1089_s11 = scalar_lea.hbm %s1412_s19, 64  ;;  %s1093_s0 = scalar_lea.hbm %s1539_s9, 128 }
 0x22a   : > { %p1090_p6 = scmp.ne.s32.totalorder %s1412_s19, %s1089_s11  ;;  %p1094_p10 = scmp.lt.u32.totalorder %s1412_s19, %s1539_s9 }
 0x22b   : > { %p1095_p11 = scmp.lt.u32.totalorder %s1093_s0, %s1089_s11  ;;  %p1097_p13 = scmp.lt.u32.totalorder %s1089_s11, %s1412_s19 }
 0x22c   : > { %p1091_p7 = pnand %p1090_p6, %p1323_p4 }
 0x22d   : > { %p1096_p12 = por %p1095_p11, %p1094_p10 }
 0x22e   : > { %p1092_p9 = pneg %p1091_p7 }
 0x22f   : > { %p1098_p0 = por %p1097_p13, %p1096_p12 }
 0x231   : > { %p1099_p1 = pnand %p1098_p0, %p1092_p9 }
 0x233   : > { %1102 = shalt.err (!%p1099_p1)
}
 0x234   : > { %s1553_s12 = scalar_lea.sflag [#allocation5], %s1400_s28  ;;  %v667_v54 = vadd.f32 %v666_v49, %v665_v51  ;;  %v668_v55 = vmul.f32 %v664_v53, %v647_v40  ;;  %s1103_s2 = scalar_lea.vmem %s1422_s24, 64 }
 0x235   : > { %995 = dma.vmem_to_hbm [thread:$0]  (%p1323_p4), %s1414_s22, 64, %s1412_s19, %s1553_s12  }
 0x236   : > { %p1104_p2 = scmp.ne.s32.totalorder %s1422_s24, %s1103_s2  ;;  %s1224_s3 = smov [#allocation6]  }
 0x237   : > { %s1107_s30 = sshll.u32 %s1224_s3, 4  ;;  %s1108_s30 = int_to_ptr.vmem [resolvable:$false] %s1107_s30 }
 0x238   : > { %p1105_p3 = pnand %p1104_p2, %p1323_p4  ;;  %s1109_s16 = scalar_lea.vmem %s1108_s30, 128 }
 0x239   : > { %p1110_p6 = scmp.lt.s32.totalorder %s1422_s24, %s1108_s30  ;;  %p1111_p7 = scmp.lt.s32.totalorder %s1109_s16, %s1103_s2 }
 0x23a   : > { %p1106_p5 = pneg %p1105_p3 }
 0x23b   : > { %p1112_p9 = por %p1111_p7, %p1110_p6 }
 0x23d   : > { %p1113_p10 = pnand %p1112_p9, %p1106_p5 }
 0x23f   : > { %1116 = shalt.err (!%p1113_p10)
}
 0x240   : > { %s1117_s22 = scalar_lea.hbm %s1420_s1, 64  ;;  %s1121_s0 = scalar_lea.hbm %s1540_s10, 128 }
 0x241   : > { %p1118_p11 = scmp.ne.s32.totalorder %s1420_s1, %s1117_s22  ;;  %p1122_p0 = scmp.lt.u32.totalorder %s1420_s1, %s1540_s10 }
 0x242   : > { %p1123_p1 = scmp.lt.u32.totalorder %s1121_s0, %s1117_s22  ;;  %p1125_p3 = scmp.lt.u32.totalorder %s1117_s22, %s1420_s1 }
 0x243   : > { %p1119_p12 = pnand %p1118_p11, %p1323_p4 }
 0x244   : > { %p1124_p2 = por %p1123_p1, %p1122_p0 }
 0x245   : > { %p1120_p13 = pneg %p1119_p12 }
 0x246   : > { %p1126_p5 = por %p1125_p3, %p1124_p2 }
 0x248   : > { %p1127_p6 = pnand %p1126_p5, %p1120_p13 }
 0x24a   : > { %1130 = shalt.err (!%p1127_p6)
}
 0x24b   : > { %s1554_s2 = scalar_lea.sflag [#allocation5], %s1400_s28  ;;  %s419_s3 = scalar_lea.vmem [#allocation2], %s1379_s20  ;;  %v669_v56 = vadd.f32 %v668_v55, %v667_v54  ;;  %vm671_vm6 = vcmask 257024  }
 0x24c   : > { %996 = dma.vmem_to_hbm [thread:$0]  (%p1323_p4), %s1422_s24, 64, %s1420_s1, %s1554_s2  }
 0x24d   : > { %s724_s30 = sshll.u32 %s419_s3, 4  ;;  %v670_v57 = vpack.c.bf16 %v669_v56, %v669_v56  ;;  %s1479_s19 = scalar_lea.hbm %s1538_s8, %s1403_s29  ;;  %s1481_s30 = int_to_ptr.vmem [resolvable:$true] %s724_s30 }
 0x24e   : > { %s1555_s28 = sand.u32 1, %s1197_s14   ;;  %s1131_s0 = scalar_lea.vmem %s1481_s30, 64 }
 0x24f   : > { %672 = vst.msk [vmem:[%s419_s3] sm:$0xf] %vm671_vm6, %v670_v57  ;;  %s700_s11 = scalar_lea.sflag [#allocation3], %s1555_s28  ;;  %p1132_p7 = scmp.ne.s32.totalorder %s1481_s30, %s1131_s0 }
 0x250   : > { %s1225_s1 = smov [#allocation2]  }
 0x251   : > { %p1133_p9 = pnand %p1132_p7, %p1323_p4  ;;  %s1135_s20 = sshll.u32 %s1225_s1, 4  ;;  %s1136_s20 = int_to_ptr.vmem [resolvable:$false] %s1135_s20 }
 0x252   : > { %s1137_s24 = scalar_lea.vmem %s1136_s20, 128  ;;  %p1138_p11 = scmp.lt.s32.totalorder %s1481_s30, %s1136_s20 }
 0x253   : > { %p1134_p10 = pneg %p1133_p9  ;;  %p1139_p12 = scmp.lt.s32.totalorder %s1137_s24, %s1131_s0 }
 0x255   : > { %p1140_p13 = por %p1139_p12, %p1138_p11 }
 0x257   : > { %p1141_p0 = pnand %p1140_p13, %p1134_p10 }
 0x259   : > { %1144 = shalt.err (!%p1141_p0)
}
 0x25a   : > { %s1145_s29 = scalar_lea.hbm %s1479_s19, 64  ;;  %s1149_s2 = scalar_lea.hbm %s1538_s8, 128 }
 0x25b   : > { %p1146_p1 = scmp.ne.s32.totalorder %s1479_s19, %s1145_s29  ;;  %p1150_p5 = scmp.lt.u32.totalorder %s1479_s19, %s1538_s8 }
 0x25c   : > { %p1151_p6 = scmp.lt.u32.totalorder %s1149_s2, %s1145_s29  ;;  %p1153_p9 = scmp.lt.u32.totalorder %s1145_s29, %s1479_s19 }
 0x25d   : > { %p1147_p2 = pnand %p1146_p1, %p1323_p4 }
 0x25e   : > { %p1152_p7 = por %p1151_p6, %p1150_p5 }
 0x25f   : > { %p1148_p3 = pneg %p1147_p2 }
 0x260   : > { %p1154_p10 = por %p1153_p9, %p1152_p7 }
 0x262   : > { %p1155_p11 = pnand %p1154_p10, %p1148_p3 }
 0x264   : > { %1158 = shalt.err (!%p1155_p11)
}
 0x265   : > { %994 = dma.vmem_to_hbm [thread:$0]  (%p1323_p4), %s1481_s30, 64, %s1479_s19, %s700_s11  }
 0x266 PF: > { %p1010_p12 = scmp.ge.s32.totalorder %s1213_s18, 2  ;;  %s764_s22 = sand.u32 1, %s1193_s13  }
 0x267   : > { %s765_s28 = scalar_lea.sflag [#allocation3], %s764_s22 }
 0x268   : > { %p1001_p13 = pnand %p1010_p12, %p1332_p8 }
 0x26a   : > { %1184 = dma.done.wait (!%p1001_p13), %s765_s28, 64  }
 0x26b   : > { %1186 = vsyncadd (!%p1001_p13), %s765_s28, 4294967232  ;;  %s1556_s0 = sadd.s32 4294967294, %s1213_s18  }
 0x26c   : > { %s773_s1 = sand.u32 1, %s1556_s0  }
 0x26d   : > { %s774_s20 = scalar_lea.sflag [#allocation5], %s773_s1 }
 0x26e   : > { %1188 = dma.done.wait (!%p1001_p13), %s774_s20, 128  }
 0x26f   : > { %1190 = vsyncadd (!%p1001_p13), %s774_s20, 4294967168  ;;  %s27_s18 = sadd.s32 1, %s1213_s18   ;;  %s1557_s13 = smov %s1197_s14 }
 0x270   : > { %p24_p4 = scmp.ge.s32.totalorder %s27_s18, 4   ;;  %s1558_s14 = smov %s1201_s15 }
 0x271   : > { %s1559_s15 = smov %s1338_s26  ;;  %s1560_s16 = smov %s1209_s17 }
 0x272   : > { %s1561_s17 = smov %s1563_s21  ;;  %26 = sbr.rel (!%p24_p4) target bundleno = 11 (0xb), region = 128 }
 0x279   :  { %788 = vsyncpa [#allocation3], 1 }
 0x27a   :  { %790 = vsyncpa [#allocation3 + $0x1], 1 }
 0x27b   :  { %791 = vsyncpa [#allocation5], 1 }
 0x27c   :  { %793 = vsyncpa [#allocation5 + $0x1], 1 }

</bundles_post_ra>
